<compile_context>
chip_gen: v6e
topology: v6e:2x2x1
jax: 0.10.0
libtpu: 0.0.40
codegen_flags: <defaults>
</compile_context>

<pallas_src>
import jax
import jax.numpy as jnp
from jax.experimental import pallas as pl
from jax.experimental.pallas import tpu as pltpu


def casrel_kernel(
    enc_ref,     # (TB, L, D)  raw encoded text for this batch tile
    maps_ref,    # (TB, L, 2)  stacked [sub_head, sub_tail] mappings
    gamma_ref,   # (1, D)      LayerNorm weight   (resident)
    beta_ref,    # (1, D)      LayerNorm bias     (resident)
    w_ref,       # (D, P)      fused head weights (resident), P = pad(2+2R, 128)
    b_ref,       # (1, P)      fused head biases  (resident)
    out_ref,     # (TB, L, P)  packed sigmoid predictions
):
    TB, L, D = enc_ref.shape
    P = w_ref.shape[1]
    n = TB * L

    enc3 = enc_ref[...]                                   # (TB, L, D) f32
    enc = enc3.reshape(n, D)                              # flattened rows

    # ---- get_subs: LayerNorm over the hidden (lane) axis ------------------
    mean = jnp.mean(enc, axis=-1, keepdims=True)
    cent = enc - mean
    var = jnp.mean(cent * cent, axis=-1, keepdims=True)
    ln = cent * jax.lax.rsqrt(var + 1e-5) * gamma_ref[...] + beta_ref[...]

    # ---- get_objs_for_specific_sub: subject vector on the UN-normalized
    #      encoded text.  sub = 0.5*(sh+st) @ enc, done as a VPU broadcast-
    #      multiply + sublane reduction (mapping is one-hot) -----------------
    wmap = 0.5 * jnp.sum(maps_ref[...], axis=-1, keepdims=True)   # (TB, L, 1)
    sub = jnp.sum(wmap * enc3, axis=1, keepdims=True)             # (TB, 1, D)
    enc2 = (enc3 + sub).reshape(n, D)                             # bcast over L

    # ---- fused head projection: one lane-dense MXU matmul for all 4 heads.
    #      rows [0:n)  -> LayerNorm branch  (sub head/tail logits, cols 0,1)
    #      rows [n:2n) -> enc+sub branch    (obj head/tail logits, cols 2:2+2R)
    x = jnp.concatenate([ln, enc2], axis=0)                       # (2n, D)
    y = jnp.dot(x, w_ref[...], preferred_element_type=jnp.float32) + b_ref[...]
    p = jax.nn.sigmoid(y)                                         # (2n, P)

    lane = jax.lax.broadcasted_iota(jnp.int32, (n, P), 1)
    packed = jnp.where(lane < 2, p[:n, :], p[n:, :])              # (n, P)
    out_ref[...] = packed.reshape(TB, L, P)


def casrel_forward(encoded_text, sub_head, sub_tail, params, *, target_rows=512):
    """encoded_text: (B, L, D); sub_head/sub_tail: (B, L) one-hot-ish rows."""
    B, L, D = encoded_text.shape
    R = params["w_oh"].shape[1]
    f32 = jnp.float32
    P = pl.cdiv(2 + 2 * R, 128) * 128        # lane-dense padded output width

    # Fuse the four head weights / biases into one (D, P) weight + (1, P) bias.
    w = jnp.zeros((D, P), f32)
    w = w.at[:, 0:1].set(params["w_sh"].astype(f32))
    w = w.at[:, 1:2].set(params["w_st"].astype(f32))
    w = w.at[:, 2:2 + R].set(params["w_oh"].astype(f32))
    w = w.at[:, 2 + R:2 + 2 * R].set(params["w_ot"].astype(f32))
    b = jnp.zeros((1, P), f32)
    b = b.at[:, 0:1].set(params["b_sh"].astype(f32))
    b = b.at[:, 1:2].set(params["b_st"].astype(f32))
    b = b.at[:, 2:2 + R].set(params["b_oh"].astype(f32))
    b = b.at[:, 2 + R:2 + 2 * R].set(params["b_ot"].astype(f32))

    maps = jnp.stack([sub_head.astype(f32), sub_tail.astype(f32)], axis=-1)  # (B,L,2)

    # Batch tile: pack as many batch elements per grid step as fit ~target_rows
    # rows, so each step is a big block instead of one 4 KiB vreg of work.
    # (For v7x's 64 MiB VMEM keep target_rows modest; at real BERT sizes a
    #  512-row f32 tile of D=768 is ~1.5 MiB, well within budget.)
    tb = max(1, min(B, max(1, target_rows // max(L, 1))))
    while B % tb != 0:
        tb -= 1
    grid = (B // tb,)

    packed = pl.pallas_call(
        casrel_kernel,
        grid=grid,
        in_specs=[
            pl.BlockSpec((tb, L, D), lambda i: (i, 0, 0)),   # encoded text
            pl.BlockSpec((tb, L, 2), lambda i: (i, 0, 0)),   # stacked sub maps
            pl.BlockSpec((1, D), lambda i: (0, 0)),          # gamma (resident)
            pl.BlockSpec((1, D), lambda i: (0, 0)),          # beta  (resident)
            pl.BlockSpec((D, P), lambda i: (0, 0)),          # fused W (resident)
            pl.BlockSpec((1, P), lambda i: (0, 0)),          # fused b (resident)
        ],
        out_specs=pl.BlockSpec((tb, L, P), lambda i: (i, 0, 0)),
        out_shape=jax.ShapeDtypeStruct((B, L, P), f32),
        compiler_params=pltpu.CompilerParams(
            dimension_semantics=("parallel",)),
    )(encoded_text.astype(f32), maps,
      params["gamma"], params["beta"], w, b)

    return {
        "sub_heads": packed[..., 0:1],
        "sub_tails": packed[..., 1:2],
        "obj_heads": packed[..., 2:2 + R],
        "obj_tails": packed[..., 2 + R:2 + 2 * R],
    }


def xavier_uniform(key, fan_in, fan_out):
    bound = (6.0 / (fan_in + fan_out)) ** 0.5
    # stored as (in, out) so kernel does x @ W directly (== x @ weight.T in torch)
    return jax.random.uniform(key, (fan_in, fan_out), jnp.float32, -bound, bound)


def make_params(key, bert_dim, num_relations):
    ks = jax.random.split(key, 8)
    inv = 1.0 / (bert_dim ** 0.5)
    return {
        "gamma": jnp.ones((1, bert_dim), jnp.float32),     # LayerNorm weight
        "beta": jnp.zeros((1, bert_dim), jnp.float32),     # LayerNorm bias
        "w_sh": xavier_uniform(ks[0], bert_dim, 1),
        "b_sh": jax.random.uniform(ks[1], (1, 1), jnp.float32, -inv, inv),
        "w_st": xavier_uniform(ks[2], bert_dim, 1),
        "b_st": jax.random.uniform(ks[3], (1, 1), jnp.float32, -inv, inv),
        "w_oh": xavier_uniform(ks[4], bert_dim, num_relations),
        "b_oh": jax.random.uniform(ks[5], (1, num_relations), jnp.float32, -inv, inv),
        "w_ot": xavier_uniform(ks[6], bert_dim, num_relations),
        "b_ot": jax.random.uniform(ks[7], (1, num_relations), jnp.float32, -inv, inv),
    }


def reference_forward(encoded_text, sub_head, sub_tail, p):
    """Pure-JAX reference of the same math, for a sanity check."""
    enc = encoded_text
    mean = jnp.mean(enc, axis=-1, keepdims=True)
    var = jnp.mean((enc - mean) ** 2, axis=-1, keepdims=True)
    ln = (enc - mean) / jnp.sqrt(var + 1e-5) * p["gamma"][0] + p["beta"][0]
    psh = jax.nn.sigmoid(ln @ p["w_sh"] + p["b_sh"][0])
    pst = jax.nn.sigmoid(ln @ p["w_st"] + p["b_st"][0])
    sh_map = sub_head[:, None, :]                      # (B,1,L)
    st_map = sub_tail[:, None, :]
    sub = (sh_map @ enc + st_map @ enc) / 2.0          # (B,1,D)
    enc2 = enc + sub
    poh = jax.nn.sigmoid(enc2 @ p["w_oh"] + p["b_oh"][0])
    pot = jax.nn.sigmoid(enc2 @ p["w_ot"] + p["b_ot"][0])
    return psh, pst, poh, pot


if __name__ == "__main__":
    B, L, D = 2, 8, 128          # batch, seq_len, bert_dim
    R = 8                        # num_relations
    VOCAB = 64

    key = jax.random.PRNGKey(0)
    k_tok, k_emb, k_sh, k_st, k_par = jax.random.split(key, 5)

    token_ids = jax.random.randint(k_tok, (B, L), 0, VOCAB)
    mask = jnp.ones((B, L), jnp.float32)

    # Synthetic deterministic "BERT": embedding lookup masked by attention mask.
    emb_table = jax.random.normal(k_emb, (VOCAB, D), jnp.float32)
    encoded_text = emb_table[token_ids] * mask[..., None]        # (B, L, D)

    # One-hot subject head/tail indicator rows (as in CasRel training).
    sub_head = jax.nn.one_hot(jnp.array([1, 3]), L, dtype=jnp.float32)  # (B, L)
    sub_tail = jax.nn.one_hot(jnp.array([2, 5]), L, dtype=jnp.float32)

    params = make_params(k_par, D, R)

    out = casrel_forward(encoded_text, sub_head, sub_tail, params)
    jax.block_until_ready(out)

    # sanity check against pure-JAX reference
    r_psh, r_pst, r_poh, r_pot = reference_forward(
        encoded_text, sub_head, sub_tail, params)
    assert jnp.allclose(out["sub_heads"], r_psh, atol=1e-5)
    assert jnp.allclose(out["sub_tails"], r_pst, atol=1e-5)
    assert jnp.allclose(out["obj_heads"], r_poh, atol=1e-5)
    assert jnp.allclose(out["obj_tails"], r_pot, atol=1e-5)

    print("KERNEL_OK")
</pallas_src>

<mosaic_0001>
module attributes {stable_mosaic.version = 11 : i64} {
  func.func @casrel_kernel(%arg0: i32, %arg1: memref<2x8x128xf32, #tpu.memory_space<vmem>>, %arg2: memref<2x8x2xf32, #tpu.memory_space<vmem>>, %arg3: memref<1x128xf32, #tpu.memory_space<vmem>>, %arg4: memref<1x128xf32, #tpu.memory_space<vmem>>, %arg5: memref<128x128xf32, #tpu.memory_space<vmem>>, %arg6: memref<1x128xf32, #tpu.memory_space<vmem>>, %arg7: memref<2x8x128xf32, #tpu.memory_space<vmem>>) attributes {dimension_semantics = [#tpu.dimension_semantics<parallel>], iteration_bounds = array<i64: 1>, scalar_prefetch = 0 : i64, scratch_operands = 0 : i64, tpu.core_type = #tpu.core_type<tc>, window_params = [{transform_indices = @transform_0, window_bounds = array<i64: 2, 8, 128>}, {transform_indices = @transform_1, window_bounds = array<i64: 2, 8, 2>}, {pipeline_mode = #tpu.pipeline_mode<synchronous>, transform_indices = @transform_2, window_bounds = array<i64: 1, 128>}, {pipeline_mode = #tpu.pipeline_mode<synchronous>, transform_indices = @transform_3, window_bounds = array<i64: 1, 128>}, {pipeline_mode = #tpu.pipeline_mode<synchronous>, transform_indices = @transform_4, window_bounds = array<i64: 128, 128>}, {pipeline_mode = #tpu.pipeline_mode<synchronous>, transform_indices = @transform_5, window_bounds = array<i64: 1, 128>}, {transform_indices = @transform_6, window_bounds = array<i64: 2, 8, 128>}]} {
    %c0 = arith.constant 0 : index
    %c0_0 = arith.constant 0 : index
    %c0_1 = arith.constant 0 : index
    %0 = vector.load %arg1[%c0, %c0_0, %c0_1] : memref<2x8x128xf32, #tpu.memory_space<vmem>>, vector<2x8x128xf32>
    %1 = vector.shape_cast %0 : vector<2x8x128xf32> to vector<16x128xf32>
    %cst = arith.constant dense<0.000000e+00> : vector<16xf32>
    %2 = vector.multi_reduction <add>, %1, %cst [1] : vector<16x128xf32> to vector<16xf32>
    %3 = vector.shape_cast %2 : vector<16xf32> to vector<16x1xf32>
    %cst_2 = arith.constant 1.280000e+02 : f32
    %4 = vector.broadcast %cst_2 : f32 to vector<16x1xf32>
    %5 = arith.divf %3, %4 : vector<16x1xf32>
    %6 = vector.broadcast %5 : vector<16x1xf32> to vector<16x128xf32>
    %7 = arith.subf %1, %6 : vector<16x128xf32>
    %8 = arith.mulf %7, %7 : vector<16x128xf32>
    %cst_3 = arith.constant dense<0.000000e+00> : vector<16xf32>
    %9 = vector.multi_reduction <add>, %8, %cst_3 [1] : vector<16x128xf32> to vector<16xf32>
    %10 = vector.shape_cast %9 : vector<16xf32> to vector<16x1xf32>
    %cst_4 = arith.constant 1.280000e+02 : f32
    %11 = vector.broadcast %cst_4 : f32 to vector<16x1xf32>
    %12 = arith.divf %10, %11 : vector<16x1xf32>
    %cst_5 = arith.constant 9.99999974E-6 : f32
    %13 = vector.broadcast %cst_5 : f32 to vector<16x1xf32>
    %14 = arith.addf %12, %13 : vector<16x1xf32>
    %15 = math.rsqrt %14 : vector<16x1xf32>
    %16 = vector.broadcast %15 : vector<16x1xf32> to vector<16x128xf32>
    %17 = arith.mulf %7, %16 : vector<16x128xf32>
    %c0_6 = arith.constant 0 : index
    %c0_7 = arith.constant 0 : index
    %18 = vector.load %arg3[%c0_6, %c0_7] : memref<1x128xf32, #tpu.memory_space<vmem>>, vector<1x128xf32>
    %19 = vector.broadcast %18 : vector<1x128xf32> to vector<16x128xf32>
    %20 = arith.mulf %17, %19 : vector<16x128xf32>
    %c0_8 = arith.constant 0 : index
    %c0_9 = arith.constant 0 : index
    %21 = vector.load %arg4[%c0_8, %c0_9] : memref<1x128xf32, #tpu.memory_space<vmem>>, vector<1x128xf32>
    %22 = vector.broadcast %21 : vector<1x128xf32> to vector<16x128xf32>
    %23 = arith.addf %20, %22 : vector<16x128xf32>
    %c0_10 = arith.constant 0 : index
    %c0_11 = arith.constant 0 : index
    %c0_12 = arith.constant 0 : index
    %24 = vector.load %arg2[%c0_10, %c0_11, %c0_12] : memref<2x8x2xf32, #tpu.memory_space<vmem>>, vector<2x8x2xf32>
    %cst_13 = arith.constant dense<0.000000e+00> : vector<2x8xf32>
    %25 = vector.multi_reduction <add>, %24, %cst_13 [2] : vector<2x8x2xf32> to vector<2x8xf32>
    %26 = vector.shape_cast %25 : vector<2x8xf32> to vector<2x8x1xf32>
    %cst_14 = arith.constant 5.000000e-01 : f32
    %27 = vector.broadcast %cst_14 : f32 to vector<2x8x1xf32>
    %28 = arith.mulf %27, %26 : vector<2x8x1xf32>
    %29 = vector.broadcast %28 : vector<2x8x1xf32> to vector<2x8x128xf32>
    %30 = arith.mulf %29, %0 : vector<2x8x128xf32>
    %cst_15 = arith.constant dense<0.000000e+00> : vector<2x128xf32>
    %31 = vector.multi_reduction <add>, %30, %cst_15 [1] : vector<2x8x128xf32> to vector<2x128xf32>
    %32 = vector.shape_cast %31 : vector<2x128xf32> to vector<2x1x128xf32>
    %33 = vector.broadcast %32 : vector<2x1x128xf32> to vector<2x8x128xf32>
    %34 = arith.addf %0, %33 : vector<2x8x128xf32>
    %35 = vector.shape_cast %34 : vector<2x8x128xf32> to vector<16x128xf32>
    %36 = tpu.concatenate %23, %35 in 0 : vector<16x128xf32>, vector<16x128xf32> -> vector<32x128xf32>
    %c0_16 = arith.constant 0 : index
    %c0_17 = arith.constant 0 : index
    %37 = vector.load %arg5[%c0_16, %c0_17] : memref<128x128xf32, #tpu.memory_space<vmem>>, vector<128x128xf32>
    %cst_18 = arith.constant dense<0.000000e+00> : vector<32x128xf32>
    %38 = tpu.matmul %36, %37, %cst_18 {dimension_numbers = #tpu.dot_dimension_numbers<[1], [0], [0], [1], [0, 0, 1, 1], [], []>} : vector<32x128xf32>, vector<128x128xf32>, vector<32x128xf32> -> vector<32x128xf32>
    %c0_19 = arith.constant 0 : index
    %c0_20 = arith.constant 0 : index
    %39 = vector.load %arg6[%c0_19, %c0_20] : memref<1x128xf32, #tpu.memory_space<vmem>>, vector<1x128xf32>
    %40 = vector.broadcast %39 : vector<1x128xf32> to vector<32x128xf32>
    %41 = arith.addf %38, %40 : vector<32x128xf32>
    %42 = arith.negf %41 : vector<32x128xf32>
    %43 = math.exp %42 : vector<32x128xf32>
    %cst_21 = arith.constant 1.000000e+00 : f32
    %44 = vector.broadcast %cst_21 : f32 to vector<32x128xf32>
    %45 = arith.addf %44, %43 : vector<32x128xf32>
    %46 = arith.divf %44, %45 : vector<32x128xf32>
    %47 = tpu.iota {dimensions = array<i32: 1>} : vector<16x128xi32>
    %c2_i32 = arith.constant 2 : i32
    %48 = vector.broadcast %c2_i32 : i32 to vector<16x128xi32>
    %49 = arith.cmpi slt, %47, %48 : vector<16x128xi32>
    %50 = vector.extract_strided_slice %46 {offsets = [0, 0], sizes = [16, 128], strides = [1, 1]} : vector<32x128xf32> to vector<16x128xf32>
    %51 = vector.extract_strided_slice %46 {offsets = [16, 0], sizes = [16, 128], strides = [1, 1]} : vector<32x128xf32> to vector<16x128xf32>
    %52 = arith.select %49, %50, %51 : vector<16x128xi1>, vector<16x128xf32>
    %53 = vector.shape_cast %52 : vector<16x128xf32> to vector<2x8x128xf32>
    %c0_22 = arith.constant 0 : index
    %c0_23 = arith.constant 0 : index
    %c0_24 = arith.constant 0 : index
    %54 = vector.load %arg7[%c0_22, %c0_23, %c0_24] : memref<2x8x128xf32, #tpu.memory_space<vmem>>, vector<2x8x128xf32>
    tpu.vector_store %arg7[%c0_22, %c0_23, %c0_24], %53 {strides = array<i32>} : memref<2x8x128xf32, #tpu.memory_space<vmem>>, vector<2x8x128xf32>,
    return
  }
  func.func @transform_0(%arg0: i32) -> (i32, i32, i32) {
    %c0_i32 = arith.constant 0 : i32
    %c0_i32_0 = arith.constant 0 : i32
    %c0_i32_1 = arith.constant 0 : i32
    return %arg0, %c0_i32, %c0_i32_0 : i32, i32, i32
  }
  func.func @transform_1(%arg0: i32) -> (i32, i32, i32) {
    %c0_i32 = arith.constant 0 : i32
    %c0_i32_0 = arith.constant 0 : i32
    %c0_i32_1 = arith.constant 0 : i32
    return %arg0, %c0_i32, %c0_i32_0 : i32, i32, i32
  }
  func.func @transform_2(%arg0: i32) -> (i32, i32) {
    %c0_i32 = arith.constant 0 : i32
    %c0_i32_0 = arith.constant 0 : i32
    %c0_i32_1 = arith.constant 0 : i32
    return %c0_i32, %c0_i32_0 : i32, i32
  }
  func.func @transform_3(%arg0: i32) -> (i32, i32) {
    %c0_i32 = arith.constant 0 : i32
    %c0_i32_0 = arith.constant 0 : i32
    %c0_i32_1 = arith.constant 0 : i32
    return %c0_i32, %c0_i32_0 : i32, i32
  }
  func.func @transform_4(%arg0: i32) -> (i32, i32) {
    %c0_i32 = arith.constant 0 : i32
    %c0_i32_0 = arith.constant 0 : i32
    %c0_i32_1 = arith.constant 0 : i32
    return %c0_i32, %c0_i32_0 : i32, i32
  }
  func.func @transform_5(%arg0: i32) -> (i32, i32) {
    %c0_i32 = arith.constant 0 : i32
    %c0_i32_0 = arith.constant 0 : i32
    %c0_i32_1 = arith.constant 0 : i32
    return %c0_i32, %c0_i32_0 : i32, i32
  }
  func.func @transform_6(%arg0: i32) -> (i32, i32, i32) {
    %c0_i32 = arith.constant 0 : i32
    %c0_i32_0 = arith.constant 0 : i32
    %c0_i32_1 = arith.constant 0 : i32
    return %arg0, %c0_i32, %c0_i32_0 : i32, i32, i32
  }
}

</mosaic_0001>

<bundles_post_ra>
// kernel: tpu_custom_call.1
= control target key start
LH: loop header
LB: loop body
LE: loop exit
PB: predicated region body
PF: predicated region fallthrough
CT: control target
= control target key end

     0   :  { %11 = vsyncpa [#allocation3], 0  ;;  %s525_s0 = inlined_call_operand.vmem [shape: f32[2,8,128], index: 0, kind: input, shape index: {}]   ;;  %s526_s1 = inlined_call_operand.vmem [shape: f32[2,8,2], index: 1, kind: input, shape index: {}]   ;;  %s527_s2 = inlined_call_operand.vmem [shape: f32[1,128], index: 2, kind: input, shape index: {}]   ;;  %s528_s3 = inlined_call_operand.vmem [shape: f32[1,128], index: 3, kind: input, shape index: {}]   ;;  %s529_s4 = inlined_call_operand.hbm [shape: f32[128,128], index: 4, kind: input, shape index: {}]   ;;  %s530_s5 = inlined_call_operand.vmem [shape: f32[1,128], index: 5, kind: input, shape index: {}]   ;;  %s531_s6 = inlined_call_operand.hbm [shape: f32[2,8,128], index: 6, kind: output, shape index: {}]  }
   0x1   :  { %12 = vsyncpa [#allocation4], 0  ;;  %s429_s21 = smov [#allocation2]  }
   0x2   :  { %s26_s22 = sshll.u32 %s429_s21, 4  ;;  %s27_s22 = int_to_ptr.vmem [resolvable:$true] %s26_s22 }
   0x3   :  { %s393_s23 = scalar_lea.vmem %s27_s22, 2048  ;;  %p398_p1 = scmp.lt.s32.totalorder %s27_s22, %s27_s22 }
   0x4   :  { %p394_p0 = scmp.ne.s32.totalorder %s27_s22, %s393_s23  ;;  %p399_p2 = scmp.lt.s32.totalorder %s393_s23, %s393_s23 }
   0x6   :  { %p400_p3 = por %p399_p2, %p398_p1 }
   0x8   :  { %p401_p4 = pnand %p400_p3, %p394_p0 }
   0xa   :  { %404 = shalt.err (!%p401_p4)
}
   0xb   :  { %s430_s24 = smov 128   ;;  %s431_s25 = smov 8  }
   0xc   :  { %32 = dma.hbm_to_vmem [thread:$0]  %s529_s4, 2048, %s27_s22, [#allocation3], %s430_s24, %s430_s24, %s431_s25  }
   0xd   :  { %425 = dma.done.wait [#allocation3], 2048  }
   0xe   :  { %426 = vsyncadd [#allocation3], 4294965248  ;;  %v477_v0 = vld [vmem:[%s525_s0] sm:$0xff]  ;;  %v483_v1 = vld [vmem:[%s525_s0 + $0x8] sm:$0xff]  ;;  %vm83_vm0 = vcmask 15360  }
   0xf   :  { %40 = vadd.xlane.f32.xlu0 %v477_v0  ;;  %v81_v2 = vld [vmem:[%s526_s1] sm:$0xff]  ;;  %v123_v4 = vld [vmem:[#allocation2 + $0x78] sm:$0xff]  ;;  %v122_v5 = vld [vmem:[#allocation2 + $0x70] sm:$0xff] }
  0x10   :  { %v84_v3 = vsel %vm83_vm0, %v81_v2, 0.0  ;;  %329 = vmatprep.subr.mxu1 %v123_v4  ;;  %291 = vmatprep.subr.mxu0 %v123_v4  ;;  %v121_v6 = vld [vmem:[#allocation2 + $0x68] sm:$0xff]  ;;  %v120_v17 = vld [vmem:[#allocation2 + $0x60] sm:$0xff]  ;;  %v119_v18 = vld [vmem:[#allocation2 + $0x58] sm:$0xff] }
  0x11   :  { %345 = vmatpush3.msra.mxu1 %v123_v4  ;;  %292 = vmatpush3.msra.mxu0 %v123_v4  ;;  %v82_v15 = vld [vmem:[%s526_s1 + $0x8] sm:$0xff]  ;;  %v118_v21 = vld [vmem:[#allocation2 + $0x50] sm:$0xff]  ;;  %v116_v25 = vld [vmem:[#allocation2 + $0x40] sm:$0xff] }
  0x12   :  { %330 = vmatprep.subr.mxu1 %v122_v5  ;;  %293 = vmatprep.subr.mxu0 %v122_v5  ;;  %v87_v16 = vsel %vm83_vm0, %v82_v15, 0.0  ;;  %v117_v23 = vld [vmem:[#allocation2 + $0x48] sm:$0xff]  ;;  %v115_v27 = vld [vmem:[#allocation2 + $0x38] sm:$0xff]  ;;  %v114_v29 = vld [vmem:[#allocation2 + $0x30] sm:$0xff] }
  0x13   :  { %42 = vadd.xlane.f32.xlu0 %v483_v1  ;;  %346 = vmatpush3.msra.mxu1 %v122_v5  ;;  %v113_v30 = vld [vmem:[#allocation2 + $0x28] sm:$0xff]  ;;  %v112_v32 = vld [vmem:[#allocation2 + $0x20] sm:$0xff]  ;;  %v111_v34 = vld [vmem:[#allocation2 + $0x18] sm:$0xff] }
  0x14   :  { %294 = vmatpush3.msra.mxu0 %v122_v5  ;;  %331 = vmatprep.subr.mxu1 %v121_v6  ;;  %v110_v36 = vld [vmem:[#allocation2 + $0x10] sm:$0xff]  ;;  %v109_v38 = vld [vmem:[#allocation2 + $0x8] sm:$0xff]  ;;  %v108_v39 = vld [vmem:[#allocation2] sm:$0xff] }
  0x15   :  { %295 = vmatprep.subr.mxu0 %v121_v6  ;;  %347 = vmatpush3.msra.mxu1 %v121_v6  ;;  %v264_v53 = vld [vmem:[%s527_s2] ss:$0 sm:$0xff] }
  0x16   :  { %296 = vmatpush3.msra.mxu0 %v121_v6  ;;  %332 = vmatprep.subr.mxu1 %v120_v17  ;;  %v265_v56 = vld [vmem:[%s528_s3] ss:$0 sm:$0xff]  ;;  %s432_s3 = smov [#allocation5]  }
  0x17   :  { %85 = vadd.xlane.f32.xlu0 %v84_v3  ;;  %297 = vmatprep.subr.mxu0 %v120_v17  ;;  %v266_v3 = vld [vmem:[%s530_s5] ss:$0 sm:$0xff]  ;;  %s252_s5 = sshll.u32 %s432_s3, 4  ;;  %s253_s5 = int_to_ptr.vmem [resolvable:$true] %s252_s5 }
  0x18   :  { %348 = vmatpush3.msra.mxu1 %v120_v17  ;;  %298 = vmatpush3.msra.mxu0 %v120_v17  ;;  %s405_s14 = scalar_lea.vmem %s253_s5, 256  ;;  %p410_p6 = scmp.lt.s32.totalorder %s253_s5, %s253_s5 }
  0x19   :  { %333 = vmatprep.subr.mxu1 %v119_v18  ;;  %299 = vmatprep.subr.mxu0 %v119_v18  ;;  %p406_p5 = scmp.ne.s32.totalorder %s253_s5, %s405_s14  ;;  %p411_p7 = scmp.lt.s32.totalorder %s405_s14, %s405_s14 }
  0x1a   :  { %349 = vmatpush3.msra.mxu1 %v119_v18  ;;  %300 = vmatpush3.msra.mxu0 %v119_v18 }
  0x1b   :  { %334 = vmatprep.subr.mxu1 %v118_v21  ;;  %301 = vmatprep.subr.mxu0 %v118_v21  ;;  %p412_p8 = por %p411_p7, %p410_p6 }
  0x1c   :  { %350 = vmatpush3.msra.mxu1 %v118_v21  ;;  %302 = vmatpush3.msra.mxu0 %v118_v21 }
  0x1d   :  { %335 = vmatprep.subr.mxu1 %v117_v23  ;;  %303 = vmatprep.subr.mxu0 %v117_v23  ;;  %p413_p9 = pnand %p412_p8, %p406_p5 }
  0x1e   :  { %351 = vmatpush3.msra.mxu1 %v117_v23  ;;  %304 = vmatpush3.msra.mxu0 %v117_v23  ;;  %v240_v23 = vlaneseq }
  0x1f   :  { %336 = vmatprep.subr.mxu1 %v116_v25  ;;  %305 = vmatprep.subr.mxu0 %v116_v25 }
  0x20   :  { %352 = vmatpush3.msra.mxu1 %v116_v25  ;;  %306 = vmatpush3.msra.mxu0 %v116_v25 }
  0x21   :  { %337 = vmatprep.subr.mxu1 %v115_v27  ;;  %307 = vmatprep.subr.mxu0 %v115_v27 }
  0x22   :  { %353 = vmatpush3.msra.mxu1 %v115_v27  ;;  %308 = vmatpush3.msra.mxu0 %v115_v27 }
  0x23   :  { %338 = vmatprep.subr.mxu1 %v114_v29  ;;  %309 = vmatprep.subr.mxu0 %v114_v29 }
  0x24   :  { %354 = vmatpush3.msra.mxu1 %v114_v29  ;;  %310 = vmatpush3.msra.mxu0 %v114_v29 }
  0x25   :  { %339 = vmatprep.subr.mxu1 %v113_v30  ;;  %311 = vmatprep.subr.mxu0 %v113_v30 }
  0x26   :  { %355 = vmatpush3.msra.mxu1 %v113_v30  ;;  %312 = vmatpush3.msra.mxu0 %v113_v30 }
  0x27   :  { %340 = vmatprep.subr.mxu1 %v112_v32  ;;  %313 = vmatprep.subr.mxu0 %v112_v32 }
  0x28   :  { %356 = vmatpush3.msra.mxu1 %v112_v32  ;;  %314 = vmatpush3.msra.mxu0 %v112_v32 }
  0x29   :  { %341 = vmatprep.subr.mxu1 %v111_v34  ;;  %315 = vmatprep.subr.mxu0 %v111_v34 }
  0x2a   :  { %357 = vmatpush3.msra.mxu1 %v111_v34  ;;  %316 = vmatpush3.msra.mxu0 %v111_v34 }
  0x2b   :  { %342 = vmatprep.subr.mxu1 %v110_v36  ;;  %317 = vmatprep.subr.mxu0 %v110_v36 }
  0x2c   :  { %358 = vmatpush3.msra.mxu1 %v110_v36  ;;  %318 = vmatpush3.msra.mxu0 %v110_v36 }
  0x2d   :  { %343 = vmatprep.subr.mxu1 %v109_v38  ;;  %319 = vmatprep.subr.mxu0 %v109_v38 }
  0x2e   :  { %359 = vmatpush3.msra.mxu1 %v109_v38  ;;  %320 = vmatpush3.msra.mxu0 %v109_v38 }
  0x2f   :  { %344 = vmatprep.subr.mxu1 %v108_v39  ;;  %321 = vmatprep.subr.mxu0 %v108_v39 }
  0x30   :  { %360 = vmatpush3.msra.mxu1 %v108_v39  ;;  %322 = vmatpush3.msra.mxu0 %v108_v39 }
  0x98   :  { %v41_v7 = vpop.xlane.xlu0 %40 }
  0x99   :  { %v45_v8 = vmul.f32 0.0078125, %v41_v7 }
  0x9b   :  { %v491_v9 = vsub.f32 %v477_v0, %v45_v8 }
  0x9c   :  { %v43_v10 = vpop.xlane.xlu0 %42 }
  0x9d   :  { %v46_v11 = vmul.f32 0.0078125, %v43_v10  ;;  %v49_v12 = vmul.f32 %v491_v9, %v491_v9 }
  0x9f   :  { %v496_v13 = vsub.f32 %v483_v1, %v46_v11  ;;  %51 = vadd.xlane.f32.xlu1 %v49_v12 }
  0xa0   :  { %v86_v19 = vpop.xlane.xlu0 %85 }
  0xa1   :  { %v50_v14 = vmul.f32 %v496_v13, %v496_v13  ;;  %v90_v20 = vmul.f32 0.5, %v86_v19 }
  0xa3   :  { %53 = vadd.xlane.f32.xlu1 %v50_v14  ;;  %v92_v22 = vmul.f32 %v90_v20, %v477_v0 }
  0xa5   :  { %v94_v24 = vrot.slane %v92_v22, 4 }
  0xa7   :  { %88 = vadd.xlane.f32.xlu1 %v87_v16  ;;  %v95_v26 = vadd.f32 %v94_v24, %v92_v22  ;;  %v241_v24 = vand.u32 127, %v240_v23 }
  0xa9   :  { %v96_v28 = vrot.slane %v95_v26, 2  ;;  %vm242_vm1 = vcmp.lt.s32.totalorder %v241_v24, 2 }
  0xab   :  { %v97_v31 = vadd.f32 %v96_v28, %v95_v26 }
  0xad   :  { %v98_v33 = vrot.slane %v97_v31, 1 }
  0xaf   :  { %v99_v35 = vadd.f32 %v98_v33, %v97_v31 }
  0xb1   :  { %v106_v37 = vadd.f32 %v99_v35, %v477_v0 }
  0xb3   :  { %326 = vmatprep.mubr.f32.mxu1 %v106_v37 }
 0x128   :  { %v52_v40 = vpop.xlane.xlu1 %51 }
 0x129   :  { %v55_v41 = vmul.f32 0.0078125, %v52_v40 }
 0x12b   :  { %v57_v42 = vadd.f32 1e-05, %v55_v41 }
 0x12c   :  { %v54_v43 = vpop.xlane.xlu1 %53 }
 0x12d   :  { %365 = vrsqrt.f32 %v57_v42  ;;  %v56_v44 = vmul.f32 0.0078125, %v54_v43 }
 0x12f   :  { %v58_v45 = vadd.f32 1e-05, %v56_v44 }
 0x130   :  { %v89_v46 = vpop.xlane.xlu1 %88 }
 0x131   :  { %367 = vrsqrt.f32 %v58_v45  ;;  %v91_v47 = vmul.f32 0.5, %v89_v46 }
 0x133   :  { %v93_v48 = vmul.f32 %v91_v47, %v483_v1 }
 0x135   :  { %v100_v49 = vrot.slane %v93_v48, 4 }
 0x137   :  { %v101_v50 = vadd.f32 %v100_v49, %v93_v48 }
 0x139   :  { %v102_v51 = vrot.slane %v101_v50, 2 }
 0x13a   :  { %v366_v52 = vpop.eup %365 }
 0x13b   :  { %v103_v54 = vadd.f32 %v102_v51, %v101_v50  ;;  %v61_v55 = vmul.f32 %v366_v52, %v491_v9 }
 0x13d   :  { %v104_v57 = vrot.slane %v103_v54, 1  ;;  %v70_v58 = vmul.f32 %v264_v53, %v61_v55 }
 0x13e   :  { %v368_v59 = vpop.eup %367 }
 0x13f   :  { %v62_v60 = vmul.f32 %v368_v59, %v496_v13  ;;  %v79_v61 = vadd.f32 %v265_v56, %v70_v58  ;;  %v105_v62 = vadd.f32 %v104_v57, %v103_v54 }
 0x141   :  { %v71_v63 = vmul.f32 %v264_v53, %v62_v60  ;;  %323 = vmatprep.mubr.f32.mxu0 %v79_v61  ;;  %v107_v0 = vadd.f32 %v105_v62, %v483_v1 }
 0x143   :  { %v80_v2 = vadd.f32 %v265_v56, %v71_v63  ;;  %327 = vmatmul.mubr.f32.vlgmr.msra.gmra.mxu1 %v107_v0 }
 0x145   :  { %324 = vmatmul.mubr.f32.vlgmr.msra.gmra.mxu0 %v80_v2 }
 0x203   :  { %v328_v4 = vpop.f32.mrf.mxu1 }
 0x204   :  { %v213_v5 = vadd.f32 %v328_v4, %v266_v3 }
 0x205   :  { %v325_v6 = vpop.f32.mrf.mxu0  ;;  %v207_v7 = vpop.f32.mrf.mxu1 }
 0x206   :  { %v270_v8 = vmul.f32 -1.442695, %v213_v5  ;;  %v203_v9 = vadd.f32 %v325_v6, %v266_v3  ;;  %v208_v10 = vadd.f32 %v266_v3, %v207_v7 }
 0x207   :  { %v197_v11 = vpop.f32.mrf.mxu0 }
 0x208   :  { %369 = vpow2.f32 %v270_v8  ;;  %v268_v12 = vmul.f32 -1.442695, %v203_v9  ;;  %v269_v13 = vmul.f32 -1.442695, %v208_v10  ;;  %v198_v14 = vadd.f32 %v266_v3, %v197_v11 }
 0x20a   :  { %371 = vpow2.f32 %v268_v12  ;;  %v267_v1 = vmul.f32 -1.442695, %v198_v14 }
 0x20b   :  { %373 = vpow2.f32 %v269_v13 }
 0x20c   :  { %375 = vpow2.f32 %v267_v1 }
 0x215   :  { %v370_v15 = vpop.eup %369 }
 0x216   :  { %v231_v16 = vadd.f32 1.0, %v370_v15 }
 0x217   :  { %v372_v17 = vpop.eup %371 }
 0x218   :  { %v374_v18 = vpop.eup %373  ;;  %v229_v19 = vadd.f32 1.0, %v372_v17  ;;  %377 = vrcp.f32 %v231_v16 }
 0x219   :  { %v376_v20 = vpop.eup %375  ;;  %v230_v21 = vadd.f32 1.0, %v374_v18 }
 0x21a   :  { %379 = vrcp.f32 %v229_v19  ;;  %v228_v22 = vadd.f32 1.0, %v376_v20 }
 0x21b   :  { %381 = vrcp.f32 %v230_v21 }
 0x21c   :  { %383 = vrcp.f32 %v228_v22 }
 0x225   :  { %v378_v25 = vpop.eup %377 }
 0x227   :  { %v380_v26 = vpop.eup %379 }
 0x228   :  { %v382_v27 = vpop.eup %381  ;;  %v244_v28 = vsel %vm242_vm1, %v380_v26, %v378_v25 }
 0x229   :  { %v384_v29 = vpop.eup %383  ;;  %246 = vst [vmem:[#allocation5 + $0x8] sm:$0xff] %v244_v28 }
 0x22a   :  { %v243_v30 = vsel %vm242_vm1, %v384_v29, %v382_v27 }
 0x22b   :  { %245 = vst [vmem:[#allocation5] sm:$0xff] %v243_v30 }
 0x22c   :  { %416 = shalt.err (!%p413_p9)
}
 0x22d   :  { %258 = dma.vmem_to_hbm [thread:$0]  %s253_s5, 256, %s531_s6, [#allocation4], %s430_s24, %s430_s24, %s431_s25  }
 0x22e   :  { %427 = dma.done.wait [#allocation4], 256  }
 0x22f   :  { %428 = vsyncadd [#allocation4], 4294967040 }
 0x230   :  { %262 = vsyncpa [#allocation3], 1 }
 0x231   :  { %263 = vsyncpa [#allocation4], 1 }

</bundles_post_ra>
